<compile_context>
chip_gen: v5e
topology: v5e:2x2
jax: 0.10.0
libtpu: 0.0.40
codegen_flags: <defaults>
</compile_context>

<pallas_src>
import functools

import jax
import jax.numpy as jnp
from jax.experimental import pallas as pl
from jax.experimental.pallas import tpu as pltpu

# ---------------- config (small, consistent with the module) ----------------
SEQ = 8             # number of vision tokens
DIM = 32            # hidden_size
HEADS = 4           # num_heads
HEAD_DIM = DIM // HEADS
INTER = 64          # intermediate_size
EPS = 1e-6
NSEG = 2            # number of segments encoded in cu_seqlens (static)

HS = SEQ * HEADS    # head-stacked row count
LOG2_SEQ = SEQ.bit_length() - 1
assert SEQ & (SEQ - 1) == 0 and HEADS & (HEADS - 1) == 0  # shifts/ands below


# ------------------------------ Pallas kernel -------------------------------
def vision_block_kernel(
    cu_ref,        # SMEM (NSEG+1,) int32  -- scalar-prefetched cu_seqlens
    x_ref,         # (S, D)   f32
    n1w_ref,       # (1, D)   f32  RMSNorm1 weight
    n2w_ref,       # (1, D)   f32  RMSNorm2 weight
    qkvw_ref,      # (D, 3D)  bf16
    qkvb_ref,      # (1, 3D)  f32
    projw_ref,     # (D, D)   bf16
    projb_ref,     # (1, D)   f32
    gw_ref,        # (D, I)   bf16  gate_proj
    gb_ref,        # (1, I)   f32
    uw_ref,        # (D, I)   bf16  up_proj
    ub_ref,        # (1, I)   f32
    dw_ref,        # (I, D)   bf16  down_proj
    db_ref,        # (1, D)   f32
    cos_ref,       # (H*S, Hd) f32  head-stacked cos table
    sinr_ref,      # (H*S, Hd) f32  head-stacked sin table, rotate_half sign folded
    o_ref,         # (S, D)   f32
    attn_scratch,  # VMEM (S, D) f32
):
    S, D = SEQ, DIM
    H, Hd = HEADS, HEAD_DIM
    bf16 = jnp.bfloat16

    x = x_ref[...]

    # ---- RMSNorm 1 (f32) ----
    var1 = jnp.mean(x * x, axis=-1, keepdims=True)
    n1 = x * jax.lax.rsqrt(var1 + EPS) * n1w_ref[...]

    # ---- fused QKV projection (bf16 MXU operands, f32 accumulate) ----
    qkv = jnp.dot(n1.astype(bf16), qkvw_ref[...],
                  preferred_element_type=jnp.float32) + qkvb_ref[...]

    # ---- stack heads along rows (head-major): (H*S, Hd) slabs ----
    def stack_heads(base):
        return jnp.concatenate(
            [qkv[:, base + h * Hd: base + (h + 1) * Hd] for h in range(H)], axis=0)

    q_st = stack_heads(0)
    k_st = stack_heads(D)
    v_st = stack_heads(2 * D)

    # ---- rotary (vision variant); sign of rotate_half folded into sinr ----
    cos = cos_ref[...]
    sinr = sinr_ref[...]

    def swap_halves(t):                      # cat(x2, x1) along the Hd axis
        return jnp.concatenate([t[:, Hd // 2:], t[:, :Hd // 2]], axis=-1)

    q_st = q_st * cos + swap_halves(q_st) * sinr
    k_st = k_st * cos + swap_halves(k_st) * sinr
    q_st = q_st * (Hd ** -0.5)               # fold attention scale into q

    # ---- block-diagonal mask (same head AND same cu_seqlens segment) ----
    ridx = jax.lax.broadcasted_iota(jnp.int32, (H * S, 1), 0)
    cidx = jax.lax.broadcasted_iota(jnp.int32, (1, H * S), 1)
    r_head = jnp.right_shift(ridx, LOG2_SEQ)
    c_head = jnp.right_shift(cidx, LOG2_SEQ)
    r_tok = jnp.bitwise_and(ridx, S - 1)
    c_tok = jnp.bitwise_and(cidx, S - 1)
    seg_r = jnp.zeros_like(r_tok)
    seg_c = jnp.zeros_like(c_tok)
    for m in range(1, NSEG + 1):             # static unroll, scalar SMEM reads
        b = cu_ref[m]
        seg_r = seg_r + (r_tok >= b).astype(jnp.int32)
        seg_c = seg_c + (c_tok >= b).astype(jnp.int32)
    mask = (r_head == c_head) & (seg_r == seg_c)     # (H*S, H*S)

    # ---- attention: ONE MXU matmul for all heads' scores (Q @ K^T) ----
    scores = jax.lax.dot_general(
        q_st.astype(bf16), k_st.astype(bf16),
        (((1,), (1,)), ((), ())), preferred_element_type=jnp.float32)
    scores = jnp.where(mask, scores, -1e30)

    m_ = jnp.max(scores, axis=-1, keepdims=True)
    p = jnp.exp(scores - m_)
    p = p * pl.reciprocal(jnp.sum(p, axis=-1, keepdims=True), approx=True)

    # ---- ONE MXU matmul for all heads' P @ V ----
    pv = jnp.dot(p.astype(bf16), v_st.astype(bf16),
                 preferred_element_type=jnp.float32)            # (H*S, Hd)

    # ---- un-stack heads straight into VMEM scratch (no lane concatenate) ----
    for h in range(H):
        attn_scratch[:, h * Hd:(h + 1) * Hd] = pv[h * S:(h + 1) * S, :]

    attn = jnp.dot(attn_scratch[...].astype(bf16), projw_ref[...],
                   preferred_element_type=jnp.float32) + projb_ref[...]

    # ---- residual 1 ----
    hidden = x + attn

    # ---- RMSNorm 2 (f32) ----
    var2 = jnp.mean(hidden * hidden, axis=-1, keepdims=True)
    n2 = hidden * jax.lax.rsqrt(var2 + EPS) * n2w_ref[...]
    n2b = n2.astype(bf16)

    # ---- SwiGLU MLP ----
    g = jnp.dot(n2b, gw_ref[...], preferred_element_type=jnp.float32) + gb_ref[...]
    u = jnp.dot(n2b, uw_ref[...], preferred_element_type=jnp.float32) + ub_ref[...]
    act = g * jax.nn.sigmoid(g)              # SiLU, f32
    mlp = jnp.dot((act * u).astype(bf16), dw_ref[...],
                  preferred_element_type=jnp.float32) + db_ref[...]

    # ---- residual 2 ----
    o_ref[...] = hidden + mlp


# ------------------------------- wrapper ------------------------------------
def _full_spec(shape):
    nd = len(shape)
    # index_map receives (grid_idx, prefetch_ref) because num_scalar_prefetch=1
    return pl.BlockSpec(shape, lambda i, cu, _nd=nd: (0,) * _nd)


@jax.jit
def vision_block_forward(x, params, cos, sin, cu_seqlens):
    (n1w, n2w, qkvw, qkvb, projw, projb, gw, gb, uw, ub, dw, db) = params
    bf16 = jnp.bfloat16
    # MXU weights in bf16 (f32 accumulation in-kernel); biases / norm weights f32.
    qkvw_b, projw_b, gw_b, uw_b, dw_b = (
        w.astype(bf16) for w in (qkvw, projw, gw, uw, dw))

    # Head-stacked rotary tables; fold the rotate_half sign into sin so the
    # kernel only needs a half-swap + 2 multiplies.
    Hd = HEAD_DIM
    sin_signed = jnp.concatenate([-sin[:, :Hd // 2], sin[:, Hd // 2:]], axis=-1)
    cos_st = jnp.tile(cos, (HEADS, 1))          # (H*S, Hd), rows ordered (head, token)
    sinr_st = jnp.tile(sin_signed, (HEADS, 1))  # (H*S, Hd)

    ins = (x, n1w, n2w, qkvw_b, qkvb, projw_b, projb,
           gw_b, gb, uw_b, ub, dw_b, db, cos_st, sinr_st)

    grid_spec = pltpu.PrefetchScalarGridSpec(
        num_scalar_prefetch=1,            # cu_seqlens -> SMEM
        grid=(1,),
        in_specs=[_full_spec(a.shape) for a in ins],
        out_specs=_full_spec(x.shape),
        scratch_shapes=[pltpu.VMEM((SEQ, DIM), jnp.float32)],
    )
    return pl.pallas_call(
        vision_block_kernel,
        out_shape=jax.ShapeDtypeStruct(x.shape, jnp.float32),
        grid_spec=grid_spec,
        compiler_params=pltpu.CompilerParams(
            dimension_semantics=("arbitrary",)),
    )(cu_seqlens, *ins)


# --------------------------- pure-JAX reference ------------------------------
def reference_forward(x, params, cos, sin, cu_seqlens):
    (n1w, n2w, qkvw, qkvb, projw, projb, gw, gb, uw, ub, dw, db) = params
    S, D = x.shape
    H, Hd = HEADS, HEAD_DIM

    seg = jnp.searchsorted(cu_seqlens, jnp.arange(S, dtype=jnp.int32),
                           side="right") - 1
    bias = jnp.where(seg[:, None] == seg[None, :], 0.0, -1e30).astype(jnp.float32)

    def rms(v, w):
        return v * jax.lax.rsqrt(jnp.mean(v * v, -1, keepdims=True) + EPS) * w

    def rot_half(t):
        return jnp.concatenate([-t[..., Hd // 2:], t[..., :Hd // 2]], axis=-1)

    n1 = rms(x, n1w)
    qkv = n1 @ qkvw + qkvb
    q = qkv[:, :D].reshape(S, H, Hd)
    k = qkv[:, D:2 * D].reshape(S, H, Hd)
    v = qkv[:, 2 * D:].reshape(S, H, Hd)
    c = cos[:, None, :]
    s = sin[:, None, :]
    q = q * c + rot_half(q) * s
    k = k * c + rot_half(k) * s
    scores = jnp.einsum("shd,thd->hst", q, k) * (Hd ** -0.5) + bias[None]
    p = jax.nn.softmax(scores, axis=-1)
    attn = jnp.einsum("hst,thd->shd", p, v).reshape(S, D)
    hidden = x + attn @ projw + projb
    n2 = rms(hidden, n2w)
    g = n2 @ gw + gb
    u = n2 @ uw + ub
    return hidden + (jax.nn.silu(g) * u) @ dw + db


# --------------------------------- main --------------------------------------
if __name__ == "__main__":
    key = jax.random.PRNGKey(0)
    ks = jax.random.split(key, 16)
    sc = 0.05

    x = jax.random.normal(ks[0], (SEQ, DIM), jnp.float32)

    n1w = 1.0 + 0.01 * jax.random.normal(ks[1], (1, DIM), jnp.float32)
    n2w = 1.0 + 0.01 * jax.random.normal(ks[2], (1, DIM), jnp.float32)
    qkvw = sc * jax.random.normal(ks[3], (DIM, 3 * DIM), jnp.float32)
    qkvb = sc * jax.random.normal(ks[4], (1, 3 * DIM), jnp.float32)
    projw = sc * jax.random.normal(ks[5], (DIM, DIM), jnp.float32)
    projb = sc * jax.random.normal(ks[6], (1, DIM), jnp.float32)
    gw = sc * jax.random.normal(ks[7], (DIM, INTER), jnp.float32)
    gb = sc * jax.random.normal(ks[8], (1, INTER), jnp.float32)
    uw = sc * jax.random.normal(ks[9], (DIM, INTER), jnp.float32)
    ub = sc * jax.random.normal(ks[10], (1, INTER), jnp.float32)
    dw = sc * jax.random.normal(ks[11], (INTER, DIM), jnp.float32)
    db = sc * jax.random.normal(ks[12], (1, DIM), jnp.float32)
    params = (n1w, n2w, qkvw, qkvb, projw, projb, gw, gb, uw, ub, dw, db)

    # rotary position embeddings (seq, head_dim): emb = cat(freqs, freqs)
    pos = jnp.arange(SEQ, dtype=jnp.float32)
    inv_freq = 1.0 / (10000.0 ** (jnp.arange(0, HEAD_DIM // 2, dtype=jnp.float32)
                                  / (HEAD_DIM // 2)))
    freqs = pos[:, None] * inv_freq[None, :]                 # (S, Hd/2)
    emb = jnp.concatenate([freqs, freqs], axis=-1)           # (S, Hd)
    cos = jnp.cos(emb)
    sin = jnp.sin(emb)

    # cu_seqlens (two image segments of 4 tokens each) -- prefetched to SMEM.
    cu_seqlens = jnp.array([0, 4, 8], dtype=jnp.int32)

    out = vision_block_forward(x, params, cos, sin, cu_seqlens)
    out = jax.block_until_ready(out)

    ref = reference_forward(x, params, cos, sin, cu_seqlens)
    assert out.shape == (SEQ, DIM)
    # bf16 MXU operands + approx reciprocal -> ~1e-2-level agreement vs f32 ref.
    assert jnp.allclose(out, ref, rtol=3e-2, atol=3e-2), (
        f"max abs err {jnp.max(jnp.abs(out - ref))}"
    )
    # TODO(synk): torch.isnan / DEBUG_SHAPES prints from the original block are
    # observability only and are omitted.
    print("KERNEL_OK")
</pallas_src>

<mosaic_0001>
module attributes {stable_mosaic.version = 11 : i64} {
  func.func @vision_block_kernel(%arg0: i32, %arg1: memref<3xi32, #tpu.memory_space<smem>>, %arg2: memref<8x32xf32, #tpu.memory_space<vmem>>, %arg3: memref<1x32xf32, #tpu.memory_space<vmem>>, %arg4: memref<1x32xf32, #tpu.memory_space<vmem>>, %arg5: memref<32x96xbf16, #tpu.memory_space<vmem>>, %arg6: memref<1x96xf32, #tpu.memory_space<vmem>>, %arg7: memref<32x32xbf16, #tpu.memory_space<vmem>>, %arg8: memref<1x32xf32, #tpu.memory_space<vmem>>, %arg9: memref<32x64xbf16, #tpu.memory_space<vmem>>, %arg10: memref<1x64xf32, #tpu.memory_space<vmem>>, %arg11: memref<32x64xbf16, #tpu.memory_space<vmem>>, %arg12: memref<1x64xf32, #tpu.memory_space<vmem>>, %arg13: memref<64x32xbf16, #tpu.memory_space<vmem>>, %arg14: memref<1x32xf32, #tpu.memory_space<vmem>>, %arg15: memref<32x8xf32, #tpu.memory_space<vmem>>, %arg16: memref<32x8xf32, #tpu.memory_space<vmem>>, %arg17: memref<8x32xf32, #tpu.memory_space<vmem>>, %arg18: memref<8x32xf32, #tpu.memory_space<vmem>>) attributes {dimension_semantics = [#tpu.dimension_semantics<arbitrary>], iteration_bounds = array<i64: 1>, scalar_prefetch = 1 : i64, scratch_operands = 1 : i64, tpu.core_type = #tpu.core_type<tc>, window_params = [{pipeline_mode = #tpu.pipeline_mode<synchronous>, transform_indices = @transform_0, window_bounds = array<i64: 8, 32>}, {pipeline_mode = #tpu.pipeline_mode<synchronous>, transform_indices = @transform_1, window_bounds = array<i64: 1, 32>}, {pipeline_mode = #tpu.pipeline_mode<synchronous>, transform_indices = @transform_2, window_bounds = array<i64: 1, 32>}, {pipeline_mode = #tpu.pipeline_mode<synchronous>, transform_indices = @transform_3, window_bounds = array<i64: 32, 96>}, {pipeline_mode = #tpu.pipeline_mode<synchronous>, transform_indices = @transform_4, window_bounds = array<i64: 1, 96>}, {pipeline_mode = #tpu.pipeline_mode<synchronous>, transform_indices = @transform_5, window_bounds = array<i64: 32, 32>}, {pipeline_mode = #tpu.pipeline_mode<synchronous>, transform_indices = @transform_6, window_bounds = array<i64: 1, 32>}, {pipeline_mode = #tpu.pipeline_mode<synchronous>, transform_indices = @transform_7, window_bounds = array<i64: 32, 64>}, {pipeline_mode = #tpu.pipeline_mode<synchronous>, transform_indices = @transform_8, window_bounds = array<i64: 1, 64>}, {pipeline_mode = #tpu.pipeline_mode<synchronous>, transform_indices = @transform_9, window_bounds = array<i64: 32, 64>}, {pipeline_mode = #tpu.pipeline_mode<synchronous>, transform_indices = @transform_10, window_bounds = array<i64: 1, 64>}, {pipeline_mode = #tpu.pipeline_mode<synchronous>, transform_indices = @transform_11, window_bounds = array<i64: 64, 32>}, {pipeline_mode = #tpu.pipeline_mode<synchronous>, transform_indices = @transform_12, window_bounds = array<i64: 1, 32>}, {pipeline_mode = #tpu.pipeline_mode<synchronous>, transform_indices = @transform_13, window_bounds = array<i64: 32, 8>}, {pipeline_mode = #tpu.pipeline_mode<synchronous>, transform_indices = @transform_14, window_bounds = array<i64: 32, 8>}, {pipeline_mode = #tpu.pipeline_mode<synchronous>, transform_indices = @transform_15, window_bounds = array<i64: 8, 32>}]} {
    %c0 = arith.constant 0 : index
    %c0_0 = arith.constant 0 : index
    %0 = vector.load %arg2[%c0, %c0_0] : memref<8x32xf32, #tpu.memory_space<vmem>>, vector<8x32xf32>
    %1 = arith.mulf %0, %0 : vector<8x32xf32>
    %cst = arith.constant dense<0.000000e+00> : vector<8xf32>
    %2 = vector.multi_reduction <add>, %1, %cst [1] : vector<8x32xf32> to vector<8xf32>
    %3 = vector.shape_cast %2 : vector<8xf32> to vector<8x1xf32>
    %cst_1 = arith.constant 3.200000e+01 : f32
    %4 = vector.broadcast %cst_1 : f32 to vector<8x1xf32>
    %5 = arith.divf %3, %4 : vector<8x1xf32>
    %cst_2 = arith.constant 9.99999997E-7 : f32
    %6 = vector.broadcast %cst_2 : f32 to vector<8x1xf32>
    %7 = arith.addf %5, %6 : vector<8x1xf32>
    %8 = math.rsqrt %7 : vector<8x1xf32>
    %9 = vector.broadcast %8 : vector<8x1xf32> to vector<8x32xf32>
    %10 = arith.mulf %0, %9 : vector<8x32xf32>
    %c0_3 = arith.constant 0 : index
    %c0_4 = arith.constant 0 : index
    %11 = vector.load %arg3[%c0_3, %c0_4] : memref<1x32xf32, #tpu.memory_space<vmem>>, vector<1x32xf32>
    %12 = vector.broadcast %11 : vector<1x32xf32> to vector<8x32xf32>
    %13 = arith.mulf %10, %12 : vector<8x32xf32>
    %14 = arith.truncf %13 : vector<8x32xf32> to vector<8x32xbf16>
    %c0_5 = arith.constant 0 : index
    %c0_6 = arith.constant 0 : index
    %15 = vector.load %arg5[%c0_5, %c0_6] : memref<32x96xbf16, #tpu.memory_space<vmem>>, vector<32x96xbf16>
    %cst_7 = arith.constant dense<0.000000e+00> : vector<8x96xf32>
    %16 = tpu.matmul %14, %15, %cst_7 {dimension_numbers = #tpu.dot_dimension_numbers<[1], [0], [0], [1], [0, 0, 1, 1], [], []>} : vector<8x32xbf16>, vector<32x96xbf16>, vector<8x96xf32> -> vector<8x96xf32>
    %c0_8 = arith.constant 0 : index
    %c0_9 = arith.constant 0 : index
    %17 = vector.load %arg6[%c0_8, %c0_9] : memref<1x96xf32, #tpu.memory_space<vmem>>, vector<1x96xf32>
    %18 = vector.broadcast %17 : vector<1x96xf32> to vector<8x96xf32>
    %19 = arith.addf %16, %18 : vector<8x96xf32>
    %20 = vector.extract_strided_slice %19 {offsets = [0, 0], sizes = [8, 8], strides = [1, 1]} : vector<8x96xf32> to vector<8x8xf32>
    %21 = vector.extract_strided_slice %19 {offsets = [0, 8], sizes = [8, 8], strides = [1, 1]} : vector<8x96xf32> to vector<8x8xf32>
    %22 = vector.extract_strided_slice %19 {offsets = [0, 16], sizes = [8, 8], strides = [1, 1]} : vector<8x96xf32> to vector<8x8xf32>
    %23 = vector.extract_strided_slice %19 {offsets = [0, 24], sizes = [8, 8], strides = [1, 1]} : vector<8x96xf32> to vector<8x8xf32>
    %24 = tpu.concatenate %20, %21, %22, %23 in 0 : vector<8x8xf32>, vector<8x8xf32>, vector<8x8xf32>, vector<8x8xf32> -> vector<32x8xf32>
    %25 = vector.extract_strided_slice %19 {offsets = [0, 32], sizes = [8, 8], strides = [1, 1]} : vector<8x96xf32> to vector<8x8xf32>
    %26 = vector.extract_strided_slice %19 {offsets = [0, 40], sizes = [8, 8], strides = [1, 1]} : vector<8x96xf32> to vector<8x8xf32>
    %27 = vector.extract_strided_slice %19 {offsets = [0, 48], sizes = [8, 8], strides = [1, 1]} : vector<8x96xf32> to vector<8x8xf32>
    %28 = vector.extract_strided_slice %19 {offsets = [0, 56], sizes = [8, 8], strides = [1, 1]} : vector<8x96xf32> to vector<8x8xf32>
    %29 = tpu.concatenate %25, %26, %27, %28 in 0 : vector<8x8xf32>, vector<8x8xf32>, vector<8x8xf32>, vector<8x8xf32> -> vector<32x8xf32>
    %30 = vector.extract_strided_slice %19 {offsets = [0, 64], sizes = [8, 8], strides = [1, 1]} : vector<8x96xf32> to vector<8x8xf32>
    %31 = vector.extract_strided_slice %19 {offsets = [0, 72], sizes = [8, 8], strides = [1, 1]} : vector<8x96xf32> to vector<8x8xf32>
    %32 = vector.extract_strided_slice %19 {offsets = [0, 80], sizes = [8, 8], strides = [1, 1]} : vector<8x96xf32> to vector<8x8xf32>
    %33 = vector.extract_strided_slice %19 {offsets = [0, 88], sizes = [8, 8], strides = [1, 1]} : vector<8x96xf32> to vector<8x8xf32>
    %34 = tpu.concatenate %30, %31, %32, %33 in 0 : vector<8x8xf32>, vector<8x8xf32>, vector<8x8xf32>, vector<8x8xf32> -> vector<32x8xf32>
    %c0_10 = arith.constant 0 : index
    %c0_11 = arith.constant 0 : index
    %35 = vector.load %arg15[%c0_10, %c0_11] : memref<32x8xf32, #tpu.memory_space<vmem>>, vector<32x8xf32>
    %c0_12 = arith.constant 0 : index
    %c0_13 = arith.constant 0 : index
    %36 = vector.load %arg16[%c0_12, %c0_13] : memref<32x8xf32, #tpu.memory_space<vmem>>, vector<32x8xf32>
    %37 = arith.mulf %24, %35 : vector<32x8xf32>
    %38 = vector.extract_strided_slice %24 {offsets = [0, 4], sizes = [32, 4], strides = [1, 1]} : vector<32x8xf32> to vector<32x4xf32>
    %39 = vector.extract_strided_slice %24 {offsets = [0, 0], sizes = [32, 4], strides = [1, 1]} : vector<32x8xf32> to vector<32x4xf32>
    %40 = tpu.concatenate %38, %39 in 1 : vector<32x4xf32>, vector<32x4xf32> -> vector<32x8xf32>
    %41 = arith.mulf %40, %36 : vector<32x8xf32>
    %42 = arith.addf %37, %41 : vector<32x8xf32>
    %43 = arith.mulf %29, %35 : vector<32x8xf32>
    %44 = vector.extract_strided_slice %29 {offsets = [0, 4], sizes = [32, 4], strides = [1, 1]} : vector<32x8xf32> to vector<32x4xf32>
    %45 = vector.extract_strided_slice %29 {offsets = [0, 0], sizes = [32, 4], strides = [1, 1]} : vector<32x8xf32> to vector<32x4xf32>
    %46 = tpu.concatenate %44, %45 in 1 : vector<32x4xf32>, vector<32x4xf32> -> vector<32x8xf32>
    %47 = arith.mulf %46, %36 : vector<32x8xf32>
    %48 = arith.addf %43, %47 : vector<32x8xf32>
    %cst_14 = arith.constant 0.353553385 : f32
    %49 = vector.broadcast %cst_14 : f32 to vector<32x8xf32>
    %50 = arith.mulf %42, %49 : vector<32x8xf32>
    %51 = tpu.iota {dimensions = array<i32: 0>} : vector<32x1xi32>
    %52 = tpu.iota {dimensions = array<i32: 1>} : vector<1x32xi32>
    %c3_i32 = arith.constant 3 : i32
    %53 = vector.broadcast %c3_i32 : i32 to vector<32x1xi32>
    %54 = arith.shrsi %51, %53 : vector<32x1xi32>
    %c3_i32_15 = arith.constant 3 : i32
    %55 = vector.broadcast %c3_i32_15 : i32 to vector<1x32xi32>
    %56 = arith.shrsi %52, %55 : vector<1x32xi32>
    %c7_i32 = arith.constant 7 : i32
    %57 = vector.broadcast %c7_i32 : i32 to vector<32x1xi32>
    %58 = arith.andi %51, %57 : vector<32x1xi32>
    %c7_i32_16 = arith.constant 7 : i32
    %59 = vector.broadcast %c7_i32_16 : i32 to vector<1x32xi32>
    %60 = arith.andi %52, %59 : vector<1x32xi32>
    %c0_i32 = arith.constant 0 : i32
    %61 = vector.broadcast %c0_i32 : i32 to vector<32x1xi32>
    %c0_i32_17 = arith.constant 0 : i32
    %62 = vector.broadcast %c0_i32_17 : i32 to vector<1x32xi32>
    %c1 = arith.constant 1 : index
    %63 = memref.load %arg1[%c1] : memref<3xi32, #tpu.memory_space<smem>>
    %64 = vector.broadcast %63 : i32 to vector<32x1xi32>
    %65 = arith.cmpi sge, %58, %64 : vector<32x1xi32>
    %66 = arith.extui %65 : vector<32x1xi1> to vector<32x1xi32>
    %67 = arith.addi %61, %66 : vector<32x1xi32>
    %68 = vector.broadcast %63 : i32 to vector<1x32xi32>
    %69 = arith.cmpi sge, %60, %68 : vector<1x32xi32>
    %70 = arith.extui %69 : vector<1x32xi1> to vector<1x32xi32>
    %71 = arith.addi %62, %70 : vector<1x32xi32>
    %c2 = arith.constant 2 : index
    %72 = memref.load %arg1[%c2] : memref<3xi32, #tpu.memory_space<smem>>
    %73 = vector.broadcast %72 : i32 to vector<32x1xi32>
    %74 = arith.cmpi sge, %58, %73 : vector<32x1xi32>
    %75 = arith.extui %74 : vector<32x1xi1> to vector<32x1xi32>
    %76 = arith.addi %67, %75 : vector<32x1xi32>
    %77 = vector.broadcast %72 : i32 to vector<1x32xi32>
    %78 = arith.cmpi sge, %60, %77 : vector<1x32xi32>
    %79 = arith.extui %78 : vector<1x32xi1> to vector<1x32xi32>
    %80 = arith.addi %71, %79 : vector<1x32xi32>
    %81 = vector.broadcast %54 : vector<32x1xi32> to vector<32x32xi32>
    %82 = vector.broadcast %56 : vector<1x32xi32> to vector<32x32xi32>
    %83 = arith.cmpi eq, %81, %82 : vector<32x32xi32>
    %84 = vector.broadcast %76 : vector<32x1xi32> to vector<32x32xi32>
    %85 = vector.broadcast %80 : vector<1x32xi32> to vector<32x32xi32>
    %86 = arith.cmpi eq, %84, %85 : vector<32x32xi32>
    %87 = arith.andi %83, %86 : vector<32x32xi1>
    %88 = arith.truncf %50 : vector<32x8xf32> to vector<32x8xbf16>
    %89 = arith.truncf %48 : vector<32x8xf32> to vector<32x8xbf16>
    %cst_18 = arith.constant dense<0.000000e+00> : vector<32x32xf32>
    %90 = tpu.matmul %88, %89, %cst_18 {dimension_numbers = #tpu.dot_dimension_numbers<[1], [1], [0], [0], [0, 0, 1, 0], [], []>} : vector<32x8xbf16>, vector<32x8xbf16>, vector<32x32xf32> -> vector<32x32xf32>
    %cst_19 = arith.constant -1.000000e+30 : f32
    %91 = vector.broadcast %cst_19 : f32 to vector<32x32xf32>
    %92 = arith.select %87, %90, %91 : vector<32x32xi1>, vector<32x32xf32>
    %cst_20 = arith.constant dense<0xFF800000> : vector<32xf32>
    %93 = vector.multi_reduction <maximumf>, %92, %cst_20 [1] : vector<32x32xf32> to vector<32xf32>
    %94 = vector.shape_cast %93 : vector<32xf32> to vector<32x1xf32>
    %95 = vector.broadcast %94 : vector<32x1xf32> to vector<32x32xf32>
    %96 = arith.subf %92, %95 : vector<32x32xf32>
    %97 = math.exp %96 : vector<32x32xf32>
    %cst_21 = arith.constant dense<0.000000e+00> : vector<32xf32>
    %98 = vector.multi_reduction <add>, %97, %cst_21 [1] : vector<32x32xf32> to vector<32xf32>
    %99 = vector.shape_cast %98 : vector<32xf32> to vector<32x1xf32>
    %100 = tpu.reciprocal %99 {approx = true} : vector<32x1xf32> -> vector<32x1xf32>
    %101 = vector.broadcast %100 : vector<32x1xf32> to vector<32x32xf32>
    %102 = arith.mulf %97, %101 : vector<32x32xf32>
    %103 = arith.truncf %102 : vector<32x32xf32> to vector<32x32xbf16>
    %104 = arith.truncf %34 : vector<32x8xf32> to vector<32x8xbf16>
    %cst_22 = arith.constant dense<0.000000e+00> : vector<32x8xf32>
    %105 = tpu.matmul %103, %104, %cst_22 {dimension_numbers = #tpu.dot_dimension_numbers<[1], [0], [0], [1], [0, 0, 1, 1], [], []>} : vector<32x32xbf16>, vector<32x8xbf16>, vector<32x8xf32> -> vector<32x8xf32>
    %106 = vector.extract_strided_slice %105 {offsets = [0, 0], sizes = [8, 8], strides = [1, 1]} : vector<32x8xf32> to vector<8x8xf32>
    %c0_23 = arith.constant 0 : index
    %c0_24 = arith.constant 0 : index
    %107 = vector.load %arg18[%c0_23, %c0_24] : memref<8x32xf32, #tpu.memory_space<vmem>>, vector<8x8xf32>
    tpu.vector_store %arg18[%c0_23, %c0_24], %106 {strides = array<i32>} : memref<8x32xf32, #tpu.memory_space<vmem>>, vector<8x8xf32>,
    %108 = vector.extract_strided_slice %105 {offsets = [8, 0], sizes = [8, 8], strides = [1, 1]} : vector<32x8xf32> to vector<8x8xf32>
    %c0_25 = arith.constant 0 : index
    %c8 = arith.constant 8 : index
    %109 = vector.load %arg18[%c0_25, %c8] : memref<8x32xf32, #tpu.memory_space<vmem>>, vector<8x8xf32>
    tpu.vector_store %arg18[%c0_25, %c8], %108 {strides = array<i32>} : memref<8x32xf32, #tpu.memory_space<vmem>>, vector<8x8xf32>,
    %110 = vector.extract_strided_slice %105 {offsets = [16, 0], sizes = [8, 8], strides = [1, 1]} : vector<32x8xf32> to vector<8x8xf32>
    %c0_26 = arith.constant 0 : index
    %c16 = arith.constant 16 : index
    %111 = vector.load %arg18[%c0_26, %c16] : memref<8x32xf32, #tpu.memory_space<vmem>>, vector<8x8xf32>
    tpu.vector_store %arg18[%c0_26, %c16], %110 {strides = array<i32>} : memref<8x32xf32, #tpu.memory_space<vmem>>, vector<8x8xf32>,
    %112 = vector.extract_strided_slice %105 {offsets = [24, 0], sizes = [8, 8], strides = [1, 1]} : vector<32x8xf32> to vector<8x8xf32>
    %c0_27 = arith.constant 0 : index
    %c24 = arith.constant 24 : index
    %113 = vector.load %arg18[%c0_27, %c24] : memref<8x32xf32, #tpu.memory_space<vmem>>, vector<8x8xf32>
    tpu.vector_store %arg18[%c0_27, %c24], %112 {strides = array<i32>} : memref<8x32xf32, #tpu.memory_space<vmem>>, vector<8x8xf32>,
    %c0_28 = arith.constant 0 : index
    %c0_29 = arith.constant 0 : index
    %114 = vector.load %arg18[%c0_28, %c0_29] : memref<8x32xf32, #tpu.memory_space<vmem>>, vector<8x32xf32>
    %115 = arith.truncf %114 : vector<8x32xf32> to vector<8x32xbf16>
    %c0_30 = arith.constant 0 : index
    %c0_31 = arith.constant 0 : index
    %116 = vector.load %arg7[%c0_30, %c0_31] : memref<32x32xbf16, #tpu.memory_space<vmem>>, vector<32x32xbf16>
    %cst_32 = arith.constant dense<0.000000e+00> : vector<8x32xf32>
    %117 = tpu.matmul %115, %116, %cst_32 {dimension_numbers = #tpu.dot_dimension_numbers<[1], [0], [0], [1], [0, 0, 1, 1], [], []>} : vector<8x32xbf16>, vector<32x32xbf16>, vector<8x32xf32> -> vector<8x32xf32>
    %c0_33 = arith.constant 0 : index
    %c0_34 = arith.constant 0 : index
    %118 = vector.load %arg8[%c0_33, %c0_34] : memref<1x32xf32, #tpu.memory_space<vmem>>, vector<1x32xf32>
    %119 = vector.broadcast %118 : vector<1x32xf32> to vector<8x32xf32>
    %120 = arith.addf %117, %119 : vector<8x32xf32>
    %121 = arith.addf %0, %120 : vector<8x32xf32>
    %122 = arith.mulf %121, %121 : vector<8x32xf32>
    %cst_35 = arith.constant dense<0.000000e+00> : vector<8xf32>
    %123 = vector.multi_reduction <add>, %122, %cst_35 [1] : vector<8x32xf32> to vector<8xf32>
    %124 = vector.shape_cast %123 : vector<8xf32> to vector<8x1xf32>
    %cst_36 = arith.constant 3.200000e+01 : f32
    %125 = vector.broadcast %cst_36 : f32 to vector<8x1xf32>
    %126 = arith.divf %124, %125 : vector<8x1xf32>
    %cst_37 = arith.constant 9.99999997E-7 : f32
    %127 = vector.broadcast %cst_37 : f32 to vector<8x1xf32>
    %128 = arith.addf %126, %127 : vector<8x1xf32>
    %129 = math.rsqrt %128 : vector<8x1xf32>
    %130 = vector.broadcast %129 : vector<8x1xf32> to vector<8x32xf32>
    %131 = arith.mulf %121, %130 : vector<8x32xf32>
    %c0_38 = arith.constant 0 : index
    %c0_39 = arith.constant 0 : index
    %132 = vector.load %arg4[%c0_38, %c0_39] : memref<1x32xf32, #tpu.memory_space<vmem>>, vector<1x32xf32>
    %133 = vector.broadcast %132 : vector<1x32xf32> to vector<8x32xf32>
    %134 = arith.mulf %131, %133 : vector<8x32xf32>
    %135 = arith.truncf %134 : vector<8x32xf32> to vector<8x32xbf16>
    %c0_40 = arith.constant 0 : index
    %c0_41 = arith.constant 0 : index
    %136 = vector.load %arg9[%c0_40, %c0_41] : memref<32x64xbf16, #tpu.memory_space<vmem>>, vector<32x64xbf16>
    %cst_42 = arith.constant dense<0.000000e+00> : vector<8x64xf32>
    %137 = tpu.matmul %135, %136, %cst_42 {dimension_numbers = #tpu.dot_dimension_numbers<[1], [0], [0], [1], [0, 0, 1, 1], [], []>} : vector<8x32xbf16>, vector<32x64xbf16>, vector<8x64xf32> -> vector<8x64xf32>
    %c0_43 = arith.constant 0 : index
    %c0_44 = arith.constant 0 : index
    %138 = vector.load %arg10[%c0_43, %c0_44] : memref<1x64xf32, #tpu.memory_space<vmem>>, vector<1x64xf32>
    %139 = vector.broadcast %138 : vector<1x64xf32> to vector<8x64xf32>
    %140 = arith.addf %137, %139 : vector<8x64xf32>
    %c0_45 = arith.constant 0 : index
    %c0_46 = arith.constant 0 : index
    %141 = vector.load %arg11[%c0_45, %c0_46] : memref<32x64xbf16, #tpu.memory_space<vmem>>, vector<32x64xbf16>
    %cst_47 = arith.constant dense<0.000000e+00> : vector<8x64xf32>
    %142 = tpu.matmul %135, %141, %cst_47 {dimension_numbers = #tpu.dot_dimension_numbers<[1], [0], [0], [1], [0, 0, 1, 1], [], []>} : vector<8x32xbf16>, vector<32x64xbf16>, vector<8x64xf32> -> vector<8x64xf32>
    %c0_48 = arith.constant 0 : index
    %c0_49 = arith.constant 0 : index
    %143 = vector.load %arg12[%c0_48, %c0_49] : memref<1x64xf32, #tpu.memory_space<vmem>>, vector<1x64xf32>
    %144 = vector.broadcast %143 : vector<1x64xf32> to vector<8x64xf32>
    %145 = arith.addf %142, %144 : vector<8x64xf32>
    %146 = arith.negf %140 : vector<8x64xf32>
    %147 = math.exp %146 : vector<8x64xf32>
    %cst_50 = arith.constant 1.000000e+00 : f32
    %148 = vector.broadcast %cst_50 : f32 to vector<8x64xf32>
    %149 = arith.addf %148, %147 : vector<8x64xf32>
    %150 = arith.divf %148, %149 : vector<8x64xf32>
    %151 = arith.mulf %140, %150 : vector<8x64xf32>
    %152 = arith.mulf %151, %145 : vector<8x64xf32>
    %153 = arith.truncf %152 : vector<8x64xf32> to vector<8x64xbf16>
    %c0_51 = arith.constant 0 : index
    %c0_52 = arith.constant 0 : index
    %154 = vector.load %arg13[%c0_51, %c0_52] : memref<64x32xbf16, #tpu.memory_space<vmem>>, vector<64x32xbf16>
    %cst_53 = arith.constant dense<0.000000e+00> : vector<8x32xf32>
    %155 = tpu.matmul %153, %154, %cst_53 {dimension_numbers = #tpu.dot_dimension_numbers<[1], [0], [0], [1], [0, 0, 1, 1], [], []>} : vector<8x64xbf16>, vector<64x32xbf16>, vector<8x32xf32> -> vector<8x32xf32>
    %c0_54 = arith.constant 0 : index
    %c0_55 = arith.constant 0 : index
    %156 = vector.load %arg14[%c0_54, %c0_55] : memref<1x32xf32, #tpu.memory_space<vmem>>, vector<1x32xf32>
    %157 = vector.broadcast %156 : vector<1x32xf32> to vector<8x32xf32>
    %158 = arith.addf %155, %157 : vector<8x32xf32>
    %159 = arith.addf %121, %158 : vector<8x32xf32>
    %c0_56 = arith.constant 0 : index
    %c0_57 = arith.constant 0 : index
    %160 = vector.load %arg17[%c0_56, %c0_57] : memref<8x32xf32, #tpu.memory_space<vmem>>, vector<8x32xf32>
    tpu.vector_store %arg17[%c0_56, %c0_57], %159 {strides = array<i32>} : memref<8x32xf32, #tpu.memory_space<vmem>>, vector<8x32xf32>,
    return
  }
  func.func @transform_0(%arg0: i32, %arg1: memref<3xi32, #tpu.memory_space<smem>>) -> (i32, i32) {
    %c0_i32 = arith.constant 0 : i32
    %c0_i32_0 = arith.constant 0 : i32
    %c0_i32_1 = arith.constant 0 : i32
    return %c0_i32, %c0_i32_0 : i32, i32
  }
  func.func @transform_1(%arg0: i32, %arg1: memref<3xi32, #tpu.memory_space<smem>>) -> (i32, i32) {
    %c0_i32 = arith.constant 0 : i32
    %c0_i32_0 = arith.constant 0 : i32
    %c0_i32_1 = arith.constant 0 : i32
    return %c0_i32, %c0_i32_0 : i32, i32
  }
  func.func @transform_2(%arg0: i32, %arg1: memref<3xi32, #tpu.memory_space<smem>>) -> (i32, i32) {
    %c0_i32 = arith.constant 0 : i32
    %c0_i32_0 = arith.constant 0 : i32
    %c0_i32_1 = arith.constant 0 : i32
    return %c0_i32, %c0_i32_0 : i32, i32
  }
  func.func @transform_3(%arg0: i32, %arg1: memref<3xi32, #tpu.memory_space<smem>>) -> (i32, i32) {
    %c0_i32 = arith.constant 0 : i32
    %c0_i32_0 = arith.constant 0 : i32
    %c0_i32_1 = arith.constant 0 : i32
    return %c0_i32, %c0_i32_0 : i32, i32
  }
  func.func @transform_4(%arg0: i32, %arg1: memref<3xi32, #tpu.memory_space<smem>>) -> (i32, i32) {
    %c0_i32 = arith.constant 0 : i32
    %c0_i32_0 = arith.constant 0 : i32
    %c0_i32_1 = arith.constant 0 : i32
    return %c0_i32, %c0_i32_0 : i32, i32
  }
  func.func @transform_5(%arg0: i32, %arg1: memref<3xi32, #tpu.memory_space<smem>>) -> (i32, i32) {
    %c0_i32 = arith.constant 0 : i32
    %c0_i32_0 = arith.constant 0 : i32
    %c0_i32_1 = arith.constant 0 : i32
    return %c0_i32, %c0_i32_0 : i32, i32
  }
  func.func @transform_6(%arg0: i32, %arg1: memref<3xi32, #tpu.memory_space<smem>>) -> (i32, i32) {
    %c0_i32 = arith.constant 0 : i32
    %c0_i32_0 = arith.constant 0 : i32
    %c0_i32_1 = arith.constant 0 : i32
    return %c0_i32, %c0_i32_0 : i32, i32
  }
  func.func @transform_7(%arg0: i32, %arg1: memref<3xi32, #tpu.memory_space<smem>>) -> (i32, i32) {
    %c0_i32 = arith.constant 0 : i32
    %c0_i32_0 = arith.constant 0 : i32
    %c0_i32_1 = arith.constant 0 : i32
    return %c0_i32, %c0_i32_0 : i32, i32
  }
  func.func @transform_8(%arg0: i32, %arg1: memref<3xi32, #tpu.memory_space<smem>>) -> (i32, i32) {
    %c0_i32 = arith.constant 0 : i32
    %c0_i32_0 = arith.constant 0 : i32
    %c0_i32_1 = arith.constant 0 : i32
    return %c0_i32, %c0_i32_0 : i32, i32
  }
  func.func @transform_9(%arg0: i32, %arg1: memref<3xi32, #tpu.memory_space<smem>>) -> (i32, i32) {
    %c0_i32 = arith.constant 0 : i32
    %c0_i32_0 = arith.constant 0 : i32
    %c0_i32_1 = arith.constant 0 : i32
    return %c0_i32, %c0_i32_0 : i32, i32
  }
  func.func @transform_10(%arg0: i32, %arg1: memref<3xi32, #tpu.memory_space<smem>>) -> (i32, i32) {
    %c0_i32 = arith.constant 0 : i32
    %c0_i32_0 = arith.constant 0 : i32
    %c0_i32_1 = arith.constant 0 : i32
    return %c0_i32, %c0_i32_0 : i32, i32
  }
  func.func @transform_11(%arg0: i32, %arg1: memref<3xi32, #tpu.memory_space<smem>>) -> (i32, i32) {
    %c0_i32 = arith.constant 0 : i32
    %c0_i32_0 = arith.constant 0 : i32
    %c0_i32_1 = arith.constant 0 : i32
    return %c0_i32, %c0_i32_0 : i32, i32
  }
  func.func @transform_12(%arg0: i32, %arg1: memref<3xi32, #tpu.memory_space<smem>>) -> (i32, i32) {
    %c0_i32 = arith.constant 0 : i32
    %c0_i32_0 = arith.constant 0 : i32
    %c0_i32_1 = arith.constant 0 : i32
    return %c0_i32, %c0_i32_0 : i32, i32
  }
  func.func @transform_13(%arg0: i32, %arg1: memref<3xi32, #tpu.memory_space<smem>>) -> (i32, i32) {
    %c0_i32 = arith.constant 0 : i32
    %c0_i32_0 = arith.constant 0 : i32
    %c0_i32_1 = arith.constant 0 : i32
    return %c0_i32, %c0_i32_0 : i32, i32
  }
  func.func @transform_14(%arg0: i32, %arg1: memref<3xi32, #tpu.memory_space<smem>>) -> (i32, i32) {
    %c0_i32 = arith.constant 0 : i32
    %c0_i32_0 = arith.constant 0 : i32
    %c0_i32_1 = arith.constant 0 : i32
    return %c0_i32, %c0_i32_0 : i32, i32
  }
  func.func @transform_15(%arg0: i32, %arg1: memref<3xi32, #tpu.memory_space<smem>>) -> (i32, i32) {
    %c0_i32 = arith.constant 0 : i32
    %c0_i32_0 = arith.constant 0 : i32
    %c0_i32_1 = arith.constant 0 : i32
    return %c0_i32, %c0_i32_0 : i32, i32
  }
}

</mosaic_0001>

<bundles_post_ra>
// kernel: vision_block_forward.1
= control target key start
LH: loop header
LB: loop body
LE: loop exit
PB: predicated region body
PF: predicated region fallthrough
CT: control target
= control target key end

     0   :  { %s854_s24 = smov [#allocation4]   ;;  %s1159_s0 = inlined_call_operand.vmem [shape: s32[3], index: 0, kind: input, shape index: {}]   ;;  %s1160_s1 = inlined_call_operand.vmem [shape: f32[8,32], index: 1, kind: input, shape index: {}]   ;;  %s1161_s2 = inlined_call_operand.vmem [shape: f32[1,32], index: 2, kind: input, shape index: {}]   ;;  %s1162_s3 = inlined_call_operand.vmem [shape: f32[1,32], index: 3, kind: input, shape index: {}]   ;;  %s1163_s4 = inlined_call_operand.vmem [shape: bf16[32,96], index: 4, kind: input, shape index: {}]   ;;  %s1164_s5 = inlined_call_operand.vmem [shape: f32[1,96], index: 5, kind: input, shape index: {}]   ;;  %s1165_s6 = inlined_call_operand.vmem [shape: bf16[32,32], index: 6, kind: input, shape index: {}]   ;;  %s1166_s7 = inlined_call_operand.vmem [shape: f32[1,32], index: 7, kind: input, shape index: {}]   ;;  %s1167_s8 = inlined_call_operand.vmem [shape: bf16[32,64], index: 8, kind: input, shape index: {}]   ;;  %s1168_s9 = inlined_call_operand.vmem [shape: f32[1,64], index: 9, kind: input, shape index: {}]   ;;  %s1169_s10 = inlined_call_operand.vmem [shape: bf16[32,64], index: 10, kind: input, shape index: {}]   ;;  %s1170_s11 = inlined_call_operand.vmem [shape: f32[1,64], index: 11, kind: input, shape index: {}]   ;;  %s1171_s12 = inlined_call_operand.vmem [shape: bf16[64,32], index: 12, kind: input, shape index: {}]   ;;  %s1172_s13 = inlined_call_operand.vmem [shape: f32[1,32], index: 13, kind: input, shape index: {}]   ;;  %s1173_s14 = inlined_call_operand.vmem [shape: f32[32,8], index: 14, kind: input, shape index: {}]   ;;  %s1174_s15 = inlined_call_operand.vmem [shape: f32[32,8], index: 15, kind: input, shape index: {}]   ;;  %s1175_s16 = inlined_call_operand.hbm [shape: f32[8,32], index: 16, kind: output, shape index: {}]  }
   0x1   :  { %1176 = sst [smem:[#allocation9_spill]] %s1159_s0 }
   0x2   :  { %1177 = sst [smem:[#allocation10_spill]] %s1168_s9 }
   0x3   :  { %s1178_s23 = sld [smem:[#allocation9_spill]] }
   0x9   :  { %s22_s9 = sshll.u32 %s1178_s23, 4  ;;  %s23_s9 = int_to_ptr.vmem [resolvable:$true] %s22_s9 }
   0xa   :  { %25 = dma.vmem_to_smem %s23_s9, 16, %s854_s24, [#allocation3] }
   0xb   :  { %850 = dma.done.wait [#allocation3], 16 }
   0xc   :  { %851 = vsyncadd [#allocation3], 4294967280 }
   0xd   :  { %28 = sfence }
   0xe   :  { %v962_v0 = vld [vmem:[%s1160_s1] sm:$0xff]  ;;  %vm63_vm0 = vcmask 261120  }
   0xf   :  { %v62_v1 = vmul.f32 %v962_v0, %v962_v0 }
  0x11   :  { %v64_v2 = vsel %vm63_vm0, %v62_v1, 0.0 }
  0x12   :  { %29 = vsyncpa [#allocation6], 0  ;;  %65 = vadd.xlane.f32.xlu0 %v64_v2  ;;  %v855_v3 = vmov 32.0   ;;  %v753_v7 = vld [vmem:[%s1163_s4 + $0x8] sm:$0xff]  ;;  %v752_v9 = vld [vmem:[%s1163_s4] sm:$0xff]  ;;  %s856_s17 = smov 104  }
  0x13   :  { %788 = vrcp.f32 %v855_v3  ;;  %122 = vmatpush.bf16.msra.mxu0 %v753_v7  ;;  %v781_v21 = vld [vmem:[%s1161_s2] ss:$0 sm:$0xff]  ;;  %s857_s18 = smov 112   ;;  %s858_s2 = smov 120   ;;  %v993_v30 = vld [vmem:[%s1173_s14 + $0x18] sm:$0xff]  ;;  %v1020_v35 = vld [vmem:[%s1173_s14 + $0x10] sm:$0xff] }
  0x14   :  { %v782_v26 = vld [vmem:[%s1164_s5] ss:$0 sm:$0xff]  ;;  %s859_s19 = smov 100   ;;  %s860_s5 = smov 92   ;;  %v1027_v38 = vld [vmem:[%s1174_s15 + $0x18] sm:$0xff]  ;;  %vm175_vm5 = vcmask 31744  }
  0x15   :  { %s861_s22 = smov 32   ;;  %v1001_v31 = vld [vmem:[%s1173_s14] sm:$0xff]  ;;  %v1039_v46 = vld [vmem:[%s1174_s15 + $0x10] sm:$0xff]  ;;  %v144_v51 = vld [vmem:[%s1174_s15 + $0x8] sm:$0xff]  ;;  %vm332_vm6 = vcmask 64512   ;;  %s702_s20 = sld [smem:[#allocation4 + $0x2]] }
  0x16   :  { %v143_v44 = vld [vmem:[%s1174_s15] sm:$0xff]  ;;  %v140_v56 = vld [vmem:[%s1173_s14 + $0x8] sm:$0xff]  ;;  %s864_s14 = smov 96   ;;  %s701_s15 = sld [smem:[#allocation4 + $0x1]] }
  0x17   :  { %123 = vmatpush.bf16.msra.mxu0 %v752_v9  ;;  %s866_s21 = smov 64   ;;  %s869_s23 = smov 24  }
  0x18   :  { %s870_s9 = smov [#allocation5]  }
  0x19   :  { %v789_v4 = vpop.eup %788  ;;  %s681_s27 = sshll.u32 %s870_s9, 4  ;;  %s682_s27 = int_to_ptr.vmem [resolvable:$true] %s681_s27 }
  0x1a   :  { %v68_v5 = vmul.f32 32.0, %v789_v4  ;;  %vm72_vm1 = vweird.f32 %v789_v4 }
  0x1c   :  { %v69_v6 = vsub.f32 1.0, %v68_v5 }
  0x1e   :  { %v70_v8 = vmul.f32 %v789_v4, %v69_v6 }
  0x20   :  { %v71_v10 = vadd.f32 %v789_v4, %v70_v8 }
  0x22   :  { %v973_v11 = vsel %vm72_vm1, %v789_v4, %v71_v10 }
  0x85   :  { %v66_v12 = vpop.xlane.xlu0 %65 }
  0x86   :  { %v74_v13 = vmul.f32 %v973_v11, %v66_v12 }
  0x88   :  { %v75_v14 = vadd.f32 1e-06, %v74_v13 }
  0x8a   :  { %790 = vrsqrt.f32 %v75_v14  ;;  %vm82_vm3 = vweird.f32 %v75_v14 }
  0x90   :  { %v791_v15 = vpop.eup %790 }
  0x91   :  { %v77_v16 = vmul.f32 %v791_v15, %v75_v14  ;;  %vm83_vm2 = vweird.f32 %v791_v15 }
  0x92   :  { %vm84_vm4 = vmor %vm82_vm3, %vm83_vm2 }
  0x93   :  { %v78_v17 = vmul.f32 %v791_v15, %v77_v16 }
  0x95   :  { %v79_v18 = vmul.f32 0.5, %v78_v17 }
  0x97   :  { %v80_v19 = vsub.f32 1.5, %v79_v18 }
  0x99   :  { %v81_v20 = vmul.f32 %v791_v15, %v80_v19 }
  0x9b   :  { %v85_v22 = vsel %vm84_vm4, %v791_v15, %v81_v20 }
  0x9c   :  { %v86_v23 = vmul.f32 %v85_v22, %v962_v0 }
  0x9e   :  { %v91_v24 = vmul.f32 %v781_v21, %v86_v23 }
  0xa0   :  { %v92_v25 = vpack.c.bf16 %v91_v24, %v91_v24 }
  0xa2   :  { %700 = vmatmul.msk.bf16.vlgmr.msra.gmra.mxu0 %vm63_vm0, %v92_v25 }
 0x11f   :  { %v125_v27 = vpop.f32.mrf.mxu0 }
 0x120   :  { %v984_v28 = vadd.f32 %v782_v26, %v125_v27 }
 0x122   :  { %136 = vrot.lane.b32.xlu1 %v984_v28, %s856_s17  ;;  %133 = vrot.lane.b32.xlu0 %v984_v28, %s857_s18  ;;  %v147_v23 = vmul.f32 %v1001_v31, %v984_v28 }
 0x127   :  { %v127_v29 = vpop.f32.mrf.mxu0 }
 0x12a   :  { %130 = vrot.lane.b32.xlu1 %v984_v28, %s858_s2  ;;  %220 = vrot.lane.b32.xlu0 %v984_v28, %s859_s19  ;;  %s862_s2 = smov 124  }
 0x132   :  { %208 = vrot.lane.b32.xlu1 %v984_v28, %s860_s5  ;;  %198 = vrot.lane.b32.xlu0 %v993_v30, %s861_s22 }
 0x13a   :  { %192 = vrot.lane.b32.xlu0 %v1001_v31, %s861_s22 }
 0x194   :  { %v1005_v32 = vpop.permute.xlu1 %136  ;;  %v1007_v33 = vpop.permute.xlu0 %133 }
 0x195   :  { %224 = vrot.lane.b32.xlu1 %v1007_v33, %s859_s19  ;;  %212 = vrot.lane.b32.xlu2 %v1007_v33, %s860_s5  ;;  %v149_v31 = vmul.f32 %v1020_v35, %v1007_v33 }
 0x19c   :  { %v1011_v34 = vpop.permute.xlu1 %130  ;;  %v221_v43 = vpop.permute.xlu0 %220 }
 0x19d   :  { %222 = vrot.lane.b32.xlu1 %v1011_v34, %s859_s19  ;;  %214 = vrot.lane.b32.xlu2 %v1005_v32, %s860_s5  ;;  %v148_v20 = vmul.f32 %v140_v56, %v1011_v34 }
 0x1a4   :  { %v209_v39 = vpop.permute.xlu1 %208  ;;  %v199_v58 = vpop.permute.xlu0 %198 }
 0x1a5   :  { %226 = vrot.lane.b32.xlu2 %v1005_v32, %s859_s19  ;;  %v232_v45 = vsel %vm175_vm5, %v209_v39, %v221_v43  ;;  %s863_s19 = smov 4   ;;  %v207_v60 = vmul.f32 %v199_v58, %v1005_v32  ;;  %v282_v58 = vstv %s701_s15 }
 0x1a6   :  { %v236_v49 = vmul.f32 %v232_v45, %v143_v44 }
 0x1ac   :  { %v193_v2 = vpop.permute.xlu0 %192 }
 0x1ad   :  { %210 = vrot.lane.b32.xlu2 %v1011_v34, %s860_s5  ;;  %v204_v6 = vmul.f32 %v193_v2, %v984_v28  ;;  %s867_s5 = smov 8  }
 0x1b5   :  { %196 = vrot.lane.b32.xlu2 %v1020_v35, %s861_s22 }
 0x1ef   :  { %v213_v36 = vpop.permute.xlu2 %212 }
 0x1f7   :  { %v215_v37 = vpop.permute.xlu2 %214 }
 0x1ff   :  { %v227_v40 = vpop.permute.xlu2 %226 }
 0x200   :  { %v235_v41 = vsel %vm175_vm5, %v215_v37, %v227_v40 }
 0x201   :  { %v239_v42 = vmul.f32 %v235_v41, %v1027_v38 }
 0x203   :  { %250 = vrot.lane.b32.xlu2 %v239_v42, %s861_s22 }
 0x207   :  { %v225_v47 = vpop.permute.xlu1 %224  ;;  %v211_v52 = vpop.permute.xlu2 %210 }
 0x208   :  { %v234_v48 = vsel %vm175_vm5, %v213_v36, %v225_v47 }
 0x209   :  { %v238_v50 = vmul.f32 %v234_v48, %v1039_v46 }
 0x20b   :  { %248 = vrot.lane.b32.xlu1 %v238_v50, %s861_s22  ;;  %244 = vrot.lane.b32.xlu2 %v236_v49, %s861_s22  ;;  %v150_v49 = vmul.f32 %v993_v30, %v1005_v32 }
 0x20f   :  { %v223_v53 = vpop.permute.xlu1 %222  ;;  %v197_v57 = vpop.permute.xlu2 %196 }
 0x210   :  { %v233_v54 = vsel %vm175_vm5, %v211_v52, %v223_v53  ;;  %v206_v61 = vmul.f32 %v197_v57, %v1007_v33 }
 0x211   :  { %v237_v55 = vmul.f32 %v233_v54, %v144_v51 }
 0x213   :  { %194 = vrot.lane.b32.xlu1 %v140_v56, %s861_s22  ;;  %151 = vrot.lane.b32.xlu2 %v984_v28, %s862_s2 }
 0x214   :  { %246 = vrot.lane.b32.xlu0 %v237_v55, %s861_s22  ;;  %s868_s22 = smov 16  }
 0x21b   :  { %165 = vrot.lane.b32.xlu2 %v1011_v34, %s863_s19 }
 0x21c   :  { %153 = vrot.lane.b32.xlu0 %v1011_v34, %s862_s2 }
 0x223   :  { %157 = vrot.lane.b32.xlu2 %v1005_v32, %s862_s2 }
 0x25d   :  { %v251_v59 = vpop.permute.xlu2 %250 }
 0x25e   :  { %v259_v63 = vadd.f32 %v251_v59, %v207_v60  ;;  %v294_v59 = vstv %s702_s20  ;;  %s1179_s20 = sld [smem:[#allocation10_spill]] }
 0x265   :  { %v245_v4 = vpop.permute.xlu2 %244 }
 0x266   :  { %v256_v9 = vadd.f32 %v245_v4, %v204_v6 }
 0x26d   :  { %v152_v13 = vpop.permute.xlu2 %151 }
 0x275   :  { %v166_v17 = vpop.permute.xlu2 %165 }
 0x27d   :  { %v249_v62 = vpop.permute.xlu1 %248 }
 0x27e   :  { %v258_v1 = vadd.f32 %v249_v62, %v206_v61 }
 0x280   :  { %v325_v3 = vpack.c.bf16 %v259_v63, %v258_v1 }
 0x282   :  { %330 = vrot.lane.b32.xlu1 %v325_v3, %s864_s14 }
 0x285   :  { %v195_v5 = vpop.permute.xlu1 %194 }
 0x286   :  { %v205_v7 = vmul.f32 %v195_v5, %v1011_v34  ;;  %v247_v8 = vpop.permute.xlu0 %246 }
 0x288   :  { %v257_v10 = vadd.f32 %v247_v8, %v205_v7 }
 0x28a   :  { %v324_v12 = vpack.c.bf16 %v257_v10, %v256_v9  ;;  %163 = vrot.lane.b32.xlu1 %v984_v28, %s863_s19 }
 0x28c   :  { %328 = vrot.lane.b32.xlu0 %v324_v12, %s864_s14 }
 0x28e   :  { %v154_v14 = vpop.permute.xlu0 %153 }
 0x28f   :  { %v177_v18 = vsel %vm175_vm5, %v154_v14, %v166_v17 }
 0x290   :  { %v181_v19 = vmul.f32 %v177_v18, %v144_v51 }
 0x292   :  { %155 = vrot.lane.b32.xlu1 %v1007_v33, %s862_s2  ;;  %v185_v24 = vadd.f32 %v181_v19, %v148_v20 }
 0x294   :  { %167 = vrot.lane.b32.xlu0 %v1007_v33, %s863_s19  ;;  %v261_v36 = vmul.f32 0.35355338, %v185_v24 }
 0x29a   :  { %169 = vrot.lane.b32.xlu1 %v1005_v32, %s863_s19 }
 0x2f4   :  { %v331_v15 = vpop.permute.xlu1 %330 }
 0x2f5   :  { %v343_v16 = vsel %vm332_vm6, %v331_v15, 0 }
 0x2f6   :  { %351 = vmatpush.bf16.xpose.msra.mxu1 %v343_v16 }
 0x2fc   :  { %v164_v21 = vpop.permute.xlu1 %163 }
 0x2fd   :  { %v176_v22 = vsel %vm175_vm5, %v152_v13, %v164_v21 }
 0x2fe   :  { %v180_v25 = vmul.f32 %v176_v22, %v143_v44  ;;  %v329_v26 = vpop.permute.xlu0 %328  ;;  %v158_v44 = vpop.permute.xlu2 %157 }
 0x2ff   :  { %v340_v27 = vsel %vm332_vm6, %v329_v26, 0 }
 0x300   :  { %v184_v29 = vadd.f32 %v180_v25, %v147_v23  ;;  %352 = vmatpush.bf16.xpose.msra.mxu1 %v340_v27 }
 0x302   :  { %v260_v37 = vmul.f32 0.35355338, %v184_v29 }
 0x304   :  { %v156_v39 = vpop.permute.xlu1 %155  ;;  %v322_v40 = vpack.c.bf16 %v261_v36, %v260_v37 }
 0x306   :  { %v168_v41 = vpop.permute.xlu0 %167 }
 0x307   :  { %v178_v42 = vsel %vm175_vm5, %v156_v39, %v168_v41  ;;  %703 = vmatmul.msk.bf16.vlgmr.msra.gmra.mxu1 %vm332_vm6, %v322_v40 }
 0x308   :  { %v182_v43 = vmul.f32 %v178_v42, %v1039_v46  ;;  %v264_v46 = vlaneseq }
 0x30a   :  { %v186_v48 = vadd.f32 %v182_v43, %v149_v31  ;;  %v265_v35 = vshrl.u32 %v264_v46, 7  ;;  %v270_v55 = vand.u32 127, %v264_v46  ;;  %v415_v43 = vpack.c.bf16 %v1005_v32, %v1007_v33 }
 0x30c   :  { %v170_v45 = vpop.permute.xlu1 %169  ;;  %v262_v52 = vmul.f32 0.35355338, %v186_v48  ;;  %v276_v56 = vand.u32 7, %v265_v35  ;;  %v280_v57 = vand.u32 7, %v270_v55  ;;  %v266_v30 = vadd.s32 8, %v265_v35 }
 0x30d   :  { %v179_v47 = vsel %vm175_vm5, %v158_v44, %v170_v45  ;;  %v271_v2 = vshra.s32 %v265_v35, 3  ;;  %v275_v3 = vshra.s32 %v270_v55, 3  ;;  %v267_v6 = vadd.s32 16, %v265_v35 }
 0x30e   :  { %v183_v50 = vmul.f32 %v179_v47, %v1027_v38  ;;  %vm283_vm7 = vcmp.ge.s32.totalorder %v276_v56, %v282_v58  ;;  %vm291_vm8 = vcmp.ge.s32.totalorder %v280_v57, %v282_v58  ;;  %vm295_vm9 = vcmp.ge.s32.totalorder %v276_v56, %v294_v59 }
 0x30f   :  { %vm307_vm10 = vcmp.ge.s32.totalorder %v280_v57, %v294_v59  ;;  %v865_v38 = vmov 0   ;;  %v277_v1 = vand.u32 7, %v266_v30  ;;  %vm310_vm13 = vcmp.eq.s32.totalorder %v271_v2, %v275_v3 }
 0x310   :  { %v187_v51 = vadd.f32 %v183_v50, %v150_v49  ;;  %v287_v60 = vsel %vm283_vm7, 1, %v865_v38  ;;  %v292_v61 = vsel %vm291_vm8, 1, %v865_v38  ;;  %v299_v62 = vsel %vm295_vm9, 1, %v865_v38 }
 0x311   :  { %v308_v63 = vsel %vm307_vm10, 1, %v865_v38  ;;  %v303_v4 = vadd.s32 %v299_v62, %v287_v60  ;;  %vm284_vm11 = vcmp.ge.s32.totalorder %v277_v1, %v282_v58  ;;  %vm296_vm12 = vcmp.ge.s32.totalorder %v277_v1, %v294_v59 }
 0x312   :  { %v263_v53 = vmul.f32 0.35355338, %v187_v51  ;;  %v309_v5 = vadd.s32 %v308_v63, %v292_v61  ;;  %v288_v7 = vsel %vm284_vm11, 1, %v865_v38  ;;  %v300_v8 = vsel %vm296_vm12, 1, %v865_v38 }
 0x313   :  { %v278_v9 = vand.u32 7, %v267_v6  ;;  %v272_v10 = vshra.s32 %v266_v30, 3  ;;  %v304_v12 = vadd.s32 %v300_v8, %v288_v7  ;;  %v268_v15 = vadd.s32 24, %v265_v35 }
 0x314   :  { %v323_v54 = vpack.c.bf16 %v263_v53, %v262_v52  ;;  %vm314_vm14 = vcmp.eq.s32.totalorder %v303_v4, %v309_v5  ;;  %v273_v20 = vshra.s32 %v267_v6, 3 }
 0x315   :  { %vm318_vm15 = vmand %vm310_vm13, %vm314_vm14  ;;  %vm285_vm1 = vcmp.ge.s32.totalorder %v278_v9, %v282_v58  ;;  %vm297_vm2 = vcmp.ge.s32.totalorder %v278_v9, %v294_v59  ;;  %vm311_vm3 = vcmp.eq.s32.totalorder %v272_v10, %v275_v3  ;;  %vm315_vm4 = vcmp.eq.s32.totalorder %v304_v12, %v309_v5 }
 0x316   :  { %v289_v17 = vsel %vm285_vm1, 1, %v865_v38  ;;  %v301_v18 = vsel %vm297_vm2, 1, %v865_v38  ;;  %v279_v19 = vand.u32 7, %v268_v15  ;;  %vm319_vm5 = vmand %vm311_vm3, %vm315_vm4  ;;  %vm312_vm9 = vcmp.eq.s32.totalorder %v273_v20, %v275_v3 }
 0x317   :  { %704 = vmatmul.msk.bf16.gmra.mxu1 %vm332_vm6, %v323_v54  ;;  %v305_v21 = vadd.s32 %v301_v18, %v289_v17  ;;  %v274_v27 = vshra.s32 %v268_v15, 3  ;;  %v754_v17 = vld [vmem:[%s1165_s6] sm:$0xff]  ;;  %vm466_vm1 = vcmask 261312  }
 0x318   :  { %vm286_vm7 = vcmp.ge.s32.totalorder %v279_v19, %v282_v58  ;;  %vm298_vm8 = vcmp.ge.s32.totalorder %v279_v19, %v294_v59  ;;  %v414_v58 = vpack.c.bf16 %v1011_v34, %v984_v28 }
 0x319   :  { %vm316_vm10 = vcmp.eq.s32.totalorder %v305_v21, %v309_v5  ;;  %v290_v25 = vsel %vm286_vm7, 1, %v865_v38  ;;  %v302_v26 = vsel %vm298_vm8, 1, %v865_v38  ;;  %vm313_vm12 = vcmp.eq.s32.totalorder %v274_v27, %v275_v3 }
 0x31a   :  { %vm320_vm11 = vmand %vm312_vm9, %vm316_vm10  ;;  %v306_v29 = vadd.s32 %v302_v26, %v290_v25  ;;  %vm657_vm10 = vcmask 523264  }
 0x31c   :  { %vm317_vm13 = vcmp.eq.s32.totalorder %v306_v29, %v309_v5 }
 0x31d   :  { %vm321_vm14 = vmand %vm313_vm12, %vm317_vm13 }
 0x384   :  { %v354_v13 = vpop.f32.mrf.mxu1 }
 0x385   :  { %v364_v14 = vsel %vm318_vm15, %v354_v13, -1e+30  ;;  %vm454_vm15 = vcmask 130112  }
 0x386   :  { %v368_v16 = vsel %vm63_vm0, %v364_v14, -inf }
 0x387   :  { %369 = vmax.xlane.f32.xlu2 %v368_v16  ;;  %v755_v16 = vld [vmem:[%s1165_s6 + $0x8] sm:$0xff]  ;;  %s683_s6 = sshll.u32 %s1175_s16, 4  ;;  %s684_s6 = int_to_ptr.hbm [resolvable:$true] %s683_s6 }
 0x388   :  { %499 = vmatpush.bf16.msra.mxu3 %v755_v16 }
 0x38c   :  { %v356_v22 = vpop.f32.mrf.mxu1  ;;  %500 = vmatpush.bf16.msra.mxu3 %v754_v17 }
 0x38d   :  { %v365_v23 = vsel %vm319_vm5, %v356_v22, -1e+30  ;;  %v783_v22 = vld [vmem:[%s1166_s7] ss:$0 sm:$0xff] }
 0x38e   :  { %v371_v24 = vsel %vm63_vm0, %v365_v23, -inf }
 0x38f   :  { %372 = vmax.xlane.f32.xlu0 %v371_v24 }
 0x394   :  { %v359_v36 = vpop.f32.mrf.mxu1 }
 0x395   :  { %v366_v37 = vsel %vm320_vm11, %v359_v36, -1e+30  ;;  %v757_v36 = vld [vmem:[%s1167_s8 + $0x8] sm:$0xff] }
 0x396   :  { %v374_v39 = vsel %vm63_vm0, %v366_v37, -inf  ;;  %559 = vmatpush.bf16.msrb.mxu0 %v757_v36 }
 0x397   :  { %375 = vmax.xlane.f32.xlu1 %v374_v39  ;;  %v758_v39 = vld [vmem:[%s1169_s10] sm:$0xff] }
 0x39c   :  { %v361_v40 = vpop.f32.mrf.mxu1 }
 0x39d   :  { %v367_v41 = vsel %vm321_vm14, %v361_v40, -1e+30 }
 0x39e   :  { %v377_v42 = vsel %vm63_vm0, %v367_v41, -inf }
 0x39f   :  { %378 = vmax.xlane.f32.xlu2 %v377_v42 }
 0x3b0   :  { %420 = vrot.lane.b32.xlu1 %v415_v43, %s866_s21 }
 0x3fa   :  { %v370_v31 = vpop.xlane.xlu2 %369 }
 0x3fb   :  { %v380_v44 = vsub.f32 %v364_v14, %v370_v31 }
 0x3fd   :  { %v384_v45 = vmul.f32 1.442695, %v380_v44 }
 0x3ff   :  { %792 = vpow2.f32 %v384_v45 }
 0x402   :  { %v373_v47 = vpop.xlane.xlu0 %372 }
 0x403   :  { %v381_v48 = vsub.f32 %v365_v23, %v373_v47 }
 0x405   :  { %v793_v49 = vpop.eup %792  ;;  %v386_v50 = vmul.f32 1.442695, %v381_v48 }
 0x406   :  { %v392_v51 = vsel %vm63_vm0, %v793_v49, 0.0 }
 0x407   :  { %794 = vpow2.f32 %v386_v50  ;;  %393 = vadd.xlane.f32.xlu0 %v392_v51 }
 0x40a   :  { %v376_v52 = vpop.xlane.xlu1 %375 }
 0x40b   :  { %v382_v53 = vsub.f32 %v366_v37, %v376_v52  ;;  %v759_v37 = vld [vmem:[%s1169_s10 + $0x8] sm:$0xff] }
 0x40c   :  { %592 = vmatpush.bf16.msrb.mxu3 %v759_v37 }
 0x40d   :  { %v795_v54 = vpop.eup %794  ;;  %v388_v46 = vmul.f32 1.442695, %v382_v53  ;;  %v763_v53 = vld [vmem:[%s1171_s12 + $0x18] sm:$0xff] }
 0x40e   :  { %v395_v32 = vsel %vm63_vm0, %v795_v54, 0.0 }
 0x40f   :  { %796 = vpow2.f32 %v388_v46  ;;  %396 = vadd.xlane.f32.xlu2 %v395_v32  ;;  %v785_v46 = vld [vmem:[%s1179_s20] ss:$0 sm:$0xff]  ;;  %v761_v32 = vld [vmem:[%s1171_s12 + $0x8] sm:$0xff] }
 0x410   :  { %593 = vmatpush.bf16.msrb.mxu3 %v758_v39 }
 0x412   :  { %v379_v33 = vpop.xlane.xlu2 %378 }
 0x413   :  { %v383_v35 = vsub.f32 %v367_v41, %v379_v33 }
 0x415   :  { %v797_v55 = vpop.eup %796  ;;  %v390_v56 = vmul.f32 1.442695, %v383_v35 }
 0x416   :  { %v398_v57 = vsel %vm63_vm0, %v797_v55, 0.0 }
 0x417   :  { %798 = vpow2.f32 %v390_v56  ;;  %399 = vadd.xlane.f32.xlu2 %v398_v57 }
 0x41b   :  { %418 = vrot.lane.b32.xlu0 %v414_v58, %s866_s21 }
 0x41d   :  { %v799_v59 = vpop.eup %798 }
 0x41e   :  { %v401_v30 = vsel %vm63_vm0, %v799_v59, 0.0 }
 0x41f   :  { %402 = vadd.xlane.f32.xlu2 %v401_v30 }
 0x422   :  { %v421_v38 = vpop.permute.xlu1 %420 }
 0x423   :  { %436 = vmatpush.bf16.msra.mxu2 %v421_v38 }
 0x47a   :  { %v394_v60 = vpop.xlane.xlu0 %393 }
 0x482   :  { %v397_v61 = vpop.xlane.xlu2 %396 }
 0x483   :  { %800 = vrcp.f32 %v397_v61 }
 0x484   :  { %802 = vrcp.f32 %v394_v60 }
 0x489   :  { %v801_v62 = vpop.eup %800 }
 0x48a   :  { %v803_v63 = vpop.eup %802  ;;  %v400_v1 = vpop.xlane.xlu2 %399  ;;  %v409_v2 = vmul.f32 %v801_v62, %v795_v54  ;;  %v762_v54 = vld [vmem:[%s1171_s12 + $0x10] sm:$0xff] }
 0x48b   :  { %v408_v4 = vmul.f32 %v803_v63, %v793_v49  ;;  %v784_v49 = vld [vmem:[%s1162_s3] ss:$0 sm:$0xff] }
 0x48d   :  { %v419_v3 = vpop.permute.xlu0 %418  ;;  %v412_v5 = vpack.c.bf16 %v409_v2, %v408_v4  ;;  %v786_v4 = vld [vmem:[%s1170_s11] ss:$0 sm:$0xff] }
 0x48e   :  { %437 = vmatpush.bf16.msra.mxu2 %v419_v3 }
 0x491   :  { %705 = vmatmul.msk.bf16.vlgmr.msra.gmra.mxu2 %vm63_vm0, %v412_v5 }
 0x492   :  { %v403_v28 = vpop.xlane.xlu2 %402 }
 0x493   :  { %804 = vrcp.f32 %v403_v28 }
 0x494   :  { %806 = vrcp.f32 %v400_v1 }
 0x499   :  { %v805_v34 = vpop.eup %804 }
 0x49a   :  { %v807_v6 = vpop.eup %806  ;;  %v411_v7 = vmul.f32 %v805_v34, %v799_v59 }
 0x49b   :  { %v410_v8 = vmul.f32 %v807_v6, %v797_v55  ;;  %v760_v55 = vld [vmem:[%s1171_s12] sm:$0xff] }
 0x49d   :  { %v413_v9 = vpack.c.bf16 %v411_v7, %v410_v8 }
 0x4a1   :  { %706 = vmatmul.msk.bf16.gmra.mxu2 %vm63_vm0, %v413_v9 }
 0x514   :  { %v439_v10 = vpop.f32.mrf.mxu2 }
 0x515   :  { %449 = vst.msk [vmem:[#allocation2] sm:$0xff] %vm332_vm6, %v439_v10  ;;  %vm460_vm6 = vcmask 195712   ;;  %v787_v10 = vld [vmem:[%s1172_s13] ss:$0 sm:$0xff] }
 0x51c   :  { %v441_v12 = vpop.f32.mrf.mxu2 }
 0x51d   :  { %451 = vrot.lane.b32.xlu2 %v441_v12, %s867_s5 }
 0x524   :  { %v444_v13 = vpop.f32.mrf.mxu2 }
 0x525   :  { %457 = vrot.lane.b32.xlu0 %v444_v13, %s868_s22 }
 0x52c   :  { %v446_v14 = vpop.f32.mrf.mxu2 }
 0x52d   :  { %463 = vrot.lane.b32.xlu1 %v446_v14, %s869_s23 }
 0x577   :  { %v452_v15 = vpop.permute.xlu2 %451 }
 0x578   :  { %455 = vst.msk [vmem:[#allocation2] sm:$0xff] %vm454_vm15, %v452_v15 }
 0x597   :  { %v458_v18 = vpop.permute.xlu0 %457 }
 0x598   :  { %461 = vst.msk [vmem:[#allocation2] sm:$0xff] %vm460_vm6, %v458_v18 }
 0x59f   :  { %v464_v19 = vpop.permute.xlu1 %463 }
 0x5a0   :  { %467 = vst.msk [vmem:[#allocation2] sm:$0xff] %vm466_vm1, %v464_v19 }
 0x5a7   :  { %v468_v20 = vld [vmem:[#allocation2] sm:$0xff] }
 0x5a8   :  { %v469_v21 = vpack.c.bf16 %v468_v20, %v468_v20 }
 0x5aa   :  { %715 = vmatmul.msk.bf16.vlgmr.msra.gmra.mxu3 %vm63_vm0, %v469_v21 }
 0x62d   :  { %v502_v23 = vpop.f32.mrf.mxu3 }
 0x62e   :  { %v503_v24 = vadd.f32 %v783_v22, %v502_v23 }
 0x630   :  { %v1109_v25 = vadd.f32 %v503_v24, %v962_v0  ;;  %v756_v0 = vld [vmem:[%s1167_s8] sm:$0xff] }
 0x631   :  { %560 = vmatpush.bf16.msrb.mxu0 %v756_v0 }
 0x632   :  { %v507_v26 = vmul.f32 %v1109_v25, %v1109_v25 }
 0x634   :  { %v508_v27 = vsel %vm63_vm0, %v507_v26, 0.0 }
 0x635   :  { %v504_v29 = vpop.f32.mrf.mxu3  ;;  %509 = vadd.xlane.f32.xlu0 %v508_v27  ;;  %665 = vmatpush.bf16.msra.mxu0 %v763_v53 }
 0x639   :  { %666 = vmatpush.bf16.msra.mxu0 %v762_v54 }
 0x63d   :  { %667 = vmatpush.bf16.msra.mxu0 %v761_v32 }
 0x641   :  { %668 = vmatpush.bf16.msra.mxu0 %v760_v55 }
 0x6a8   :  { %v510_v40 = vpop.xlane.xlu0 %509 }
 0x6a9   :  { %v511_v41 = vmul.f32 %v510_v40, %v973_v11 }
 0x6ab   :  { %v512_v42 = vadd.f32 1e-06, %v511_v41 }
 0x6ad   :  { %808 = vrsqrt.f32 %v512_v42  ;;  %vm519_vm3 = vweird.f32 %v512_v42 }
 0x6b3   :  { %v809_v43 = vpop.eup %808 }
 0x6b4   :  { %v514_v31 = vmul.f32 %v809_v43, %v512_v42  ;;  %vm520_vm2 = vweird.f32 %v809_v43 }
 0x6b5   :  { %vm521_vm4 = vmor %vm519_vm3, %vm520_vm2 }
 0x6b6   :  { %v515_v44 = vmul.f32 %v809_v43, %v514_v31 }
 0x6b8   :  { %v516_v45 = vmul.f32 0.5, %v515_v44 }
 0x6ba   :  { %v517_v47 = vsub.f32 1.5, %v516_v45 }
 0x6bc   :  { %v518_v48 = vmul.f32 %v809_v43, %v517_v47 }
 0x6be   :  { %v522_v50 = vsel %vm521_vm4, %v809_v43, %v518_v48 }
 0x6bf   :  { %v523_v51 = vmul.f32 %v522_v50, %v1109_v25 }
 0x6c1   :  { %v528_v52 = vmul.f32 %v784_v49, %v523_v51 }
 0x6c3   :  { %v529_v11 = vpack.c.bf16 %v528_v52, %v528_v52 }
 0x6c5   :  { %724 = vmatmul.msk.bf16.vlgmr.msrb.gmra.mxu0 %vm63_vm0, %v529_v11  ;;  %733 = vmatmul.msk.bf16.vlgmr.msrb.gmra.mxu3 %vm63_vm0, %v529_v11 }
 0x742   :  { %v562_v33 = vpop.f32.mrf.mxu0 }
 0x743   :  { %v563_v35 = vadd.f32 %v785_v46, %v562_v33 }
 0x745   :  { %v734_v56 = vmul.f32 -1.442695, %v563_v35 }
 0x747   :  { %810 = vpow2.f32 %v734_v56 }
 0x748   :  { %v595_v57 = vpop.f32.mrf.mxu3 }
 0x749   :  { %v596_v7 = vadd.f32 %v786_v4, %v595_v57 }
 0x74a   :  { %v564_v58 = vpop.f32.mrf.mxu0 }
 0x74d   :  { %v811_v59 = vpop.eup %810 }
 0x74e   :  { %v602_v30 = vadd.f32 1.0, %v811_v59 }
 0x750   :  { %812 = vrcp.f32 %v602_v30  ;;  %v597_v38 = vpop.f32.mrf.mxu3  ;;  %v614_v63 = vand.u32 2147483648, %v602_v30  ;;  %v612_v2 = vand.u32 2147483647, %v602_v30  ;;  %vm608_vm7 = vweird.f32 %v602_v30 }
 0x752   :  { %v615_v5 = vor.u32 1.1754944e-38, %v614_v63  ;;  %vm613_vm9 = vcmp.eq.f32.partialorder %v612_v2, 8.507059e+37 }
 0x756   :  { %v813_v60 = vpop.eup %812 }
 0x757   :  { %v604_v61 = vmul.f32 %v813_v60, %v602_v30  ;;  %vm609_vm5 = vweird.f32 %v813_v60 }
 0x758   :  { %vm610_vm8 = vmor %vm608_vm7, %vm609_vm5 }
 0x759   :  { %v605_v62 = vsub.f32 1.0, %v604_v61 }
 0x75b   :  { %v606_v1 = vmul.f32 %v813_v60, %v605_v62 }
 0x75d   :  { %v607_v3 = vadd.f32 %v813_v60, %v606_v1 }
 0x75f   :  { %v611_v28 = vsel %vm610_vm8, %v813_v60, %v607_v3 }
 0x760   :  { %v616_v34 = vsel %vm613_vm9, %v615_v5, %v611_v28 }
 0x761   :  { %v618_v6 = vmul.f32 %v616_v34, %v563_v35 }
 0x763   :  { %v619_v8 = vmul.f32 %v618_v6, %v596_v7 }
 0x765   :  { %v620_v9 = vpack.c.bf16 %v619_v8, %v619_v8 }
 0x767   :  { %751 = vmatmul.msk.bf16.vlgmr.msra.gmra.mxu0 %vm657_vm10, %v620_v9 }
 0x7e4   :  { %v670_v12 = vpop.f32.mrf.mxu0 }
 0x7e5   :  { %v671_v13 = vadd.f32 %v787_v10, %v670_v12 }
 0x7e7   :  { %v674_v14 = vadd.f32 %v671_v13, %v1109_v25 }
 0x7e9   :  { %675 = vst.msk [vmem:[#allocation5] sm:$0xff] %vm63_vm0, %v674_v14 }
 0x7ea   :  { %686 = dma.vmem_to_hbm [thread:$0]  %s682_s27, 128, %s684_s6, [#allocation6]  }
 0x7ec   :  { %v672_v15 = vpop.f32.mrf.mxu0 }
 0x7ed   :  { %852 = dma.done.wait [#allocation6], 128  }
 0x7ee   :  { %853 = vsyncadd [#allocation6], 4294967168 }
 0x7ef   :  { %691 = vsyncpa [#allocation6], 1 }

</bundles_post_ra>
